<compile_context>
chip_gen: v7x
topology: tpu7x:2x2x1
jax: 0.10.0
libtpu: 0.0.40
codegen_flags: <defaults>
</compile_context>

<pallas_src>
import jax
import jax.numpy as jnp
from jax.experimental import pallas as pl
from jax.experimental.pallas import tpu as pltpu


_LANE = 128            # TPU lane width (last dim)
_MAX_TILE_ROWS = 512   # 512 rows x 128 lanes = 65536 px/tile; ~4.5 MiB VMEM w/ double buffering


def _trainer_forward_kernel(real_ref, rgb_ref, w_ref, b_ref, out_ref):
    """One grid step = one (batch, spatial-tile) pair.

    real_ref : (3, TR, 128) VMEM   -- self.real_i tile
    rgb_ref  : (3, TR, 128) VMEM   -- targets['rgb_img'] tile
    w_ref    : (2, 3) SMEM         -- stand-in generator 1x1-conv weight
    b_ref    : (2,)   SMEM         -- stand-in generator bias
    out_ref  : (3, TR, 128) VMEM   -- channel 0: fake_r, 1: fake_s, 2: rec_s
    """
    x0 = real_ref[0]
    x1 = real_ref[1]
    x2 = real_ref[2]

    # ---- stand-in generator: 1x1 conv (channel mix) + sigmoid ----
    z_r = w_ref[0, 0] * x0 + w_ref[0, 1] * x1 + w_ref[0, 2] * x2 + b_ref[0]
    z_s = w_ref[1, 0] * x0 + w_ref[1, 1] * x1 + w_ref[1, 2] * x2 + b_ref[1]
    fake_r = jax.nn.sigmoid(z_r)
    fake_s = jax.nn.sigmoid(z_s)

    # ---- s_from_r():  p_S = mean_C(rgb) / (fake_r + 1e-12); clamp to <= 1 ----
    rgb_mean = (rgb_ref[0] + rgb_ref[1] + rgb_ref[2]) * (1.0 / 3.0)
    p_s = rgb_mean / (fake_r + 1e-12)
    rec_s = jnp.minimum(p_s, 1.0)

    out_ref[0] = fake_r
    out_ref[1] = fake_s
    out_ref[2] = rec_s


def trainer_basic_forward(real_i, rgb_img, gen_w, gen_b):
    """real_i, rgb_img: (B, 3, H, W) NCHW.  Returns fake_r, fake_s, rec_s: (B, 1, H, W) f32."""
    B, C, H, W = real_i.shape
    assert C == 3
    HW = H * W

    rows = pl.cdiv(HW, _LANE)                          # 128-lane rows needed for the image
    tile_rows = rows if rows <= _MAX_TILE_ROWS else _MAX_TILE_ROWS
    num_tiles = pl.cdiv(rows, tile_rows)
    rows_padded = num_tiles * tile_rows
    hw_padded = rows_padded * _LANE

    def to_lane_dense(x):
        x = x.reshape(B, C, HW).astype(jnp.float32)
        if hw_padded != HW:
            x = jnp.pad(x, ((0, 0), (0, 0), (0, hw_padded - HW)))
        return x.reshape(B, C, rows_padded, _LANE)

    real_f = to_lane_dense(real_i)
    rgb_f = to_lane_dense(rgb_img)

    img_spec = pl.BlockSpec((None, C, tile_rows, _LANE), lambda b, t: (b, 0, t, 0))
    out_spec = pl.BlockSpec((None, 3, tile_rows, _LANE), lambda b, t: (b, 0, t, 0))
    smem_spec = pl.BlockSpec(memory_space=pltpu.MemorySpace.SMEM)

    out = pl.pallas_call(
        _trainer_forward_kernel,
        out_shape=jax.ShapeDtypeStruct((B, 3, rows_padded, _LANE), jnp.float32),
        grid=(B, num_tiles),
        in_specs=[img_spec, img_spec, smem_spec, smem_spec],
        out_specs=out_spec,
        compiler_params=pltpu.CompilerParams(
            dimension_semantics=("parallel", "parallel"),
            vmem_limit_bytes=32 * 1024 * 1024,
        ),
    )(real_f, rgb_f, gen_w.astype(jnp.float32), gen_b.astype(jnp.float32))

    out = out.reshape(B, 3, hw_padded)[:, :, :HW].reshape(B, 3, H, W)
    fake_r = out[:, 0:1]
    fake_s = out[:, 1:2]
    rec_s = out[:, 2:3]
    return fake_r, fake_s, rec_s


def _reference_forward(real_i, rgb_img, gen_w, gen_b):
    """Pure-JAX reference mirroring the PyTorch semantics."""
    real_i = real_i.astype(jnp.float32)
    rgb_img = rgb_img.astype(jnp.float32)
    z = jnp.einsum('oc,bchw->bohw', gen_w, real_i) + gen_b[None, :, None, None]
    fake_r = jax.nn.sigmoid(z[:, 0:1])
    fake_s = jax.nn.sigmoid(z[:, 1:2])
    p_s = jnp.mean(rgb_img, axis=1, keepdims=True) / (fake_r + 1e-12)
    rec_s = jnp.minimum(p_s, 1.0)
    return fake_r, fake_s, rec_s


if __name__ == "__main__":
    key = jax.random.PRNGKey(0)
    k1, k2, k3 = jax.random.split(key, 3)

    B, C, H, W = 2, 3, 16, 16
    real_i = jax.random.uniform(k1, (B, C, H, W), dtype=jnp.float32)    # self.real_i
    rgb_img = jax.random.uniform(k2, (B, C, H, W), dtype=jnp.float32)   # targets['rgb_img']

    # Deterministic stand-in generator parameters (1x1 conv: 3 -> 2 channels).
    gen_w = 0.3 * jax.random.normal(k3, (2, 3), dtype=jnp.float32)
    gen_b = jnp.array([0.1, -0.1], dtype=jnp.float32)

    fake_r, fake_s, rec_s = trainer_basic_forward(real_i, rgb_img, gen_w, gen_b)
    jax.block_until_ready((fake_r, fake_s, rec_s))

    ref_r, ref_s, ref_rec = _reference_forward(real_i, rgb_img, gen_w, gen_b)
    assert jnp.allclose(fake_r, ref_r, atol=1e-5), "fake_r mismatch"
    assert jnp.allclose(fake_s, ref_s, atol=1e-5), "fake_s mismatch"
    assert jnp.allclose(rec_s, ref_rec, atol=1e-5), "rec_s mismatch"

    print("KERNEL_OK")
</pallas_src>

<mosaic_0001>
module attributes {stable_mosaic.version = 11 : i64} {
  func.func @_trainer_forward_kernel(%arg0: i32, %arg1: i32, %arg2: memref<1x3x2x128xf32, #tpu.memory_space<vmem>>, %arg3: memref<1x3x2x128xf32, #tpu.memory_space<vmem>>, %arg4: memref<2x3xf32, #tpu.memory_space<smem>>, %arg5: memref<2xf32, #tpu.memory_space<smem>>, %arg6: memref<1x3x2x128xf32, #tpu.memory_space<vmem>>) attributes {dimension_semantics = [#tpu.dimension_semantics<parallel>, #tpu.dimension_semantics<parallel>], iteration_bounds = array<i64: 2, 1>, scalar_prefetch = 0 : i64, scratch_operands = 0 : i64, tpu.core_type = #tpu.core_type<tc>, window_params = [{transform_indices = @transform_0, window_bounds = array<i64: 1, 3, 2, 128>}, {transform_indices = @transform_1, window_bounds = array<i64: 1, 3, 2, 128>}, {transform_indices = @transform_2, window_bounds = array<i64: 2, 3>}, {transform_indices = @transform_3, window_bounds = array<i64: 2>}, {transform_indices = @transform_4, window_bounds = array<i64: 1, 3, 2, 128>}]} {
    %c0 = arith.constant 0 : index
    %c0_0 = arith.constant 0 : index
    %c0_1 = arith.constant 0 : index
    %c0_2 = arith.constant 0 : index
    %0 = vector.load %arg2[%c0, %c0_0, %c0_1, %c0_2] : memref<1x3x2x128xf32, #tpu.memory_space<vmem>>, vector<1x1x2x128xf32>
    %1 = vector.shape_cast %0 : vector<1x1x2x128xf32> to vector<2x128xf32>
    %c0_3 = arith.constant 0 : index
    %c1 = arith.constant 1 : index
    %c0_4 = arith.constant 0 : index
    %c0_5 = arith.constant 0 : index
    %2 = vector.load %arg2[%c0_3, %c1, %c0_4, %c0_5] : memref<1x3x2x128xf32, #tpu.memory_space<vmem>>, vector<1x1x2x128xf32>
    %3 = vector.shape_cast %2 : vector<1x1x2x128xf32> to vector<2x128xf32>
    %c0_6 = arith.constant 0 : index
    %c2 = arith.constant 2 : index
    %c0_7 = arith.constant 0 : index
    %c0_8 = arith.constant 0 : index
    %4 = vector.load %arg2[%c0_6, %c2, %c0_7, %c0_8] : memref<1x3x2x128xf32, #tpu.memory_space<vmem>>, vector<1x1x2x128xf32>
    %5 = vector.shape_cast %4 : vector<1x1x2x128xf32> to vector<2x128xf32>
    %c0_9 = arith.constant 0 : index
    %c0_10 = arith.constant 0 : index
    %6 = memref.load %arg4[%c0_9, %c0_10] : memref<2x3xf32, #tpu.memory_space<smem>>
    %7 = vector.broadcast %6 : f32 to vector<2x128xf32>
    %8 = arith.mulf %7, %1 : vector<2x128xf32>
    %c0_11 = arith.constant 0 : index
    %c1_12 = arith.constant 1 : index
    %9 = memref.load %arg4[%c0_11, %c1_12] : memref<2x3xf32, #tpu.memory_space<smem>>
    %10 = vector.broadcast %9 : f32 to vector<2x128xf32>
    %11 = arith.mulf %10, %3 : vector<2x128xf32>
    %12 = arith.addf %8, %11 : vector<2x128xf32>
    %c0_13 = arith.constant 0 : index
    %c2_14 = arith.constant 2 : index
    %13 = memref.load %arg4[%c0_13, %c2_14] : memref<2x3xf32, #tpu.memory_space<smem>>
    %14 = vector.broadcast %13 : f32 to vector<2x128xf32>
    %15 = arith.mulf %14, %5 : vector<2x128xf32>
    %16 = arith.addf %12, %15 : vector<2x128xf32>
    %c0_15 = arith.constant 0 : index
    %17 = memref.load %arg5[%c0_15] : memref<2xf32, #tpu.memory_space<smem>>
    %18 = vector.broadcast %17 : f32 to vector<2x128xf32>
    %19 = arith.addf %16, %18 : vector<2x128xf32>
    %c1_16 = arith.constant 1 : index
    %c0_17 = arith.constant 0 : index
    %20 = memref.load %arg4[%c1_16, %c0_17] : memref<2x3xf32, #tpu.memory_space<smem>>
    %21 = vector.broadcast %20 : f32 to vector<2x128xf32>
    %22 = arith.mulf %21, %1 : vector<2x128xf32>
    %c1_18 = arith.constant 1 : index
    %c1_19 = arith.constant 1 : index
    %23 = memref.load %arg4[%c1_18, %c1_19] : memref<2x3xf32, #tpu.memory_space<smem>>
    %24 = vector.broadcast %23 : f32 to vector<2x128xf32>
    %25 = arith.mulf %24, %3 : vector<2x128xf32>
    %26 = arith.addf %22, %25 : vector<2x128xf32>
    %c1_20 = arith.constant 1 : index
    %c2_21 = arith.constant 2 : index
    %27 = memref.load %arg4[%c1_20, %c2_21] : memref<2x3xf32, #tpu.memory_space<smem>>
    %28 = vector.broadcast %27 : f32 to vector<2x128xf32>
    %29 = arith.mulf %28, %5 : vector<2x128xf32>
    %30 = arith.addf %26, %29 : vector<2x128xf32>
    %c1_22 = arith.constant 1 : index
    %31 = memref.load %arg5[%c1_22] : memref<2xf32, #tpu.memory_space<smem>>
    %32 = vector.broadcast %31 : f32 to vector<2x128xf32>
    %33 = arith.addf %30, %32 : vector<2x128xf32>
    %34 = arith.negf %19 : vector<2x128xf32>
    %35 = math.exp %34 : vector<2x128xf32>
    %cst = arith.constant 1.000000e+00 : f32
    %36 = vector.broadcast %cst : f32 to vector<2x128xf32>
    %37 = arith.addf %36, %35 : vector<2x128xf32>
    %38 = arith.divf %36, %37 : vector<2x128xf32>
    %39 = arith.negf %33 : vector<2x128xf32>
    %40 = math.exp %39 : vector<2x128xf32>
    %cst_23 = arith.constant 1.000000e+00 : f32
    %41 = vector.broadcast %cst_23 : f32 to vector<2x128xf32>
    %42 = arith.addf %41, %40 : vector<2x128xf32>
    %43 = arith.divf %41, %42 : vector<2x128xf32>
    %c0_24 = arith.constant 0 : index
    %c0_25 = arith.constant 0 : index
    %c0_26 = arith.constant 0 : index
    %c0_27 = arith.constant 0 : index
    %44 = vector.load %arg3[%c0_24, %c0_25, %c0_26, %c0_27] : memref<1x3x2x128xf32, #tpu.memory_space<vmem>>, vector<1x1x2x128xf32>
    %45 = vector.shape_cast %44 : vector<1x1x2x128xf32> to vector<2x128xf32>
    %c0_28 = arith.constant 0 : index
    %c1_29 = arith.constant 1 : index
    %c0_30 = arith.constant 0 : index
    %c0_31 = arith.constant 0 : index
    %46 = vector.load %arg3[%c0_28, %c1_29, %c0_30, %c0_31] : memref<1x3x2x128xf32, #tpu.memory_space<vmem>>, vector<1x1x2x128xf32>
    %47 = vector.shape_cast %46 : vector<1x1x2x128xf32> to vector<2x128xf32>
    %48 = arith.addf %45, %47 : vector<2x128xf32>
    %c0_32 = arith.constant 0 : index
    %c2_33 = arith.constant 2 : index
    %c0_34 = arith.constant 0 : index
    %c0_35 = arith.constant 0 : index
    %49 = vector.load %arg3[%c0_32, %c2_33, %c0_34, %c0_35] : memref<1x3x2x128xf32, #tpu.memory_space<vmem>>, vector<1x1x2x128xf32>
    %50 = vector.shape_cast %49 : vector<1x1x2x128xf32> to vector<2x128xf32>
    %51 = arith.addf %48, %50 : vector<2x128xf32>
    %cst_36 = arith.constant 0.333333343 : f32
    %52 = vector.broadcast %cst_36 : f32 to vector<2x128xf32>
    %53 = arith.mulf %51, %52 : vector<2x128xf32>
    %cst_37 = arith.constant 9.99999996E-13 : f32
    %54 = vector.broadcast %cst_37 : f32 to vector<2x128xf32>
    %55 = arith.addf %38, %54 : vector<2x128xf32>
    %56 = arith.divf %53, %55 : vector<2x128xf32>
    %cst_38 = arith.constant 1.000000e+00 : f32
    %57 = vector.broadcast %cst_38 : f32 to vector<2x128xf32>
    %58 = arith.minimumf %56, %57 : vector<2x128xf32>
    %c0_39 = arith.constant 0 : index
    %c0_40 = arith.constant 0 : index
    %c0_41 = arith.constant 0 : index
    %c0_42 = arith.constant 0 : index
    %59 = vector.load %arg6[%c0_39, %c0_40, %c0_41, %c0_42] : memref<1x3x2x128xf32, #tpu.memory_space<vmem>>, vector<1x1x2x128xf32>
    %60 = vector.shape_cast %59 : vector<1x1x2x128xf32> to vector<2x128xf32>
    %61 = vector.shape_cast %38 : vector<2x128xf32> to vector<1x1x2x128xf32>
    tpu.vector_store %arg6[%c0_39, %c0_40, %c0_41, %c0_42], %61 {strides = array<i32>} : memref<1x3x2x128xf32, #tpu.memory_space<vmem>>, vector<1x1x2x128xf32>,
    %c0_43 = arith.constant 0 : index
    %c1_44 = arith.constant 1 : index
    %c0_45 = arith.constant 0 : index
    %c0_46 = arith.constant 0 : index
    %62 = vector.load %arg6[%c0_43, %c1_44, %c0_45, %c0_46] : memref<1x3x2x128xf32, #tpu.memory_space<vmem>>, vector<1x1x2x128xf32>
    %63 = vector.shape_cast %62 : vector<1x1x2x128xf32> to vector<2x128xf32>
    %64 = vector.shape_cast %43 : vector<2x128xf32> to vector<1x1x2x128xf32>
    tpu.vector_store %arg6[%c0_43, %c1_44, %c0_45, %c0_46], %64 {strides = array<i32>} : memref<1x3x2x128xf32, #tpu.memory_space<vmem>>, vector<1x1x2x128xf32>,
    %c0_47 = arith.constant 0 : index
    %c2_48 = arith.constant 2 : index
    %c0_49 = arith.constant 0 : index
    %c0_50 = arith.constant 0 : index
    %65 = vector.load %arg6[%c0_47, %c2_48, %c0_49, %c0_50] : memref<1x3x2x128xf32, #tpu.memory_space<vmem>>, vector<1x1x2x128xf32>
    %66 = vector.shape_cast %65 : vector<1x1x2x128xf32> to vector<2x128xf32>
    %67 = vector.shape_cast %58 : vector<2x128xf32> to vector<1x1x2x128xf32>
    tpu.vector_store %arg6[%c0_47, %c2_48, %c0_49, %c0_50], %67 {strides = array<i32>} : memref<1x3x2x128xf32, #tpu.memory_space<vmem>>, vector<1x1x2x128xf32>,
    return
  }
  func.func @transform_0(%arg0: i32, %arg1: i32) -> (i32, i32, i32, i32) {
    %c0_i32 = arith.constant 0 : i32
    %c0_i32_0 = arith.constant 0 : i32
    %c0_i32_1 = arith.constant 0 : i32
    return %arg0, %c0_i32, %arg1, %c0_i32_0 : i32, i32, i32, i32
  }
  func.func @transform_1(%arg0: i32, %arg1: i32) -> (i32, i32, i32, i32) {
    %c0_i32 = arith.constant 0 : i32
    %c0_i32_0 = arith.constant 0 : i32
    %c0_i32_1 = arith.constant 0 : i32
    return %arg0, %c0_i32, %arg1, %c0_i32_0 : i32, i32, i32, i32
  }
  func.func @transform_2(%arg0: i32, %arg1: i32) -> (i32, i32) {
    %c0_i32 = arith.constant 0 : i32
    %c0_i32_0 = arith.constant 0 : i32
    %c0_i32_1 = arith.constant 0 : i32
    return %c0_i32, %c0_i32_0 : i32, i32
  }
  func.func @transform_3(%arg0: i32, %arg1: i32) -> i32 {
    %c0_i32 = arith.constant 0 : i32
    %c0_i32_0 = arith.constant 0 : i32
    return %c0_i32 : i32
  }
  func.func @transform_4(%arg0: i32, %arg1: i32) -> (i32, i32, i32, i32) {
    %c0_i32 = arith.constant 0 : i32
    %c0_i32_0 = arith.constant 0 : i32
    %c0_i32_1 = arith.constant 0 : i32
    return %arg0, %c0_i32, %arg1, %c0_i32_0 : i32, i32, i32, i32
  }
}

</mosaic_0001>

<bundles_post_ra>
// kernel: tpu_custom_call.1
= control target key start
LH: loop header
LB: loop body
LE: loop exit
PB: predicated region body
PF: predicated region fallthrough
CT: control target
= control target key end

     0   :  { %s1148_s0 = inlined_call_operand.hbm [shape: f32[2,3,2,128], index: 0, kind: input, shape index: {}]   ;;  %s1149_s1 = inlined_call_operand.hbm [shape: f32[2,3,2,128], index: 1, kind: input, shape index: {}]   ;;  %s1150_s2 = inlined_call_operand.vmem [shape: f32[2,3], index: 2, kind: input, shape index: {}]   ;;  %s1151_s3 = inlined_call_operand.vmem [shape: f32[2], index: 3, kind: input, shape index: {}]   ;;  %s1152_s4 = inlined_call_operand.hbm [shape: f32[2,3,2,128], index: 4, kind: output, shape index: {}]  }
   0x1   :  { %1160 = sst [smem:[#allocation17_spill]] %s1148_s0 }
   0x2   :  { %1161 = sst [smem:[#allocation18_spill]] %s1150_s2 }
   0x3   :  { %1162 = sst [smem:[#allocation19_spill]] %s1151_s3 }
   0x4   :  { %9 = vsyncpa [#allocation3], 0 }
   0x5   :  { %11 = vsyncpa [#allocation3 + $0x1], 0 }
   0x6   :  { %12 = vsyncpa [#allocation7], 0 }
   0x7   :  { %14 = vsyncpa [#allocation7 + $0x1], 0 }
   0x8   :  { %15 = vsyncpa [#allocation5], 0 }
   0x9   :  { %16 = vsyncpa [#allocation10], 0 }
   0xa   :  { %17 = vsyncpa [#allocation4], 0 }
   0xb   :  { %19 = vsyncpa [#allocation4 + $0x1], 0  ;;  %s868_s15 = smov 0   ;;  %s870_s16 = smov 0  }
   0xc   :  { %s872_s17 = smov 0   ;;  %s874_s18 = smov 0  }
   0xd   :  { %s876_s19 = smov 0   ;;  %s878_s20 = smov 0  }
   0xe LB: > { %s512_s21 = sadd.s32 4294967295, %s832_s20   ;;  %s513_s22 = sadd.s32 4294967294, %s832_s20   ;;  %s832_s20 = sphi %s878_s20, %s25_s20   ;;  %s828_s19 = sphi %s876_s19, %s1186_s19   ;;  %s824_s18 = sphi %s874_s18, %s1185_s18   ;;  %s820_s17 = sphi %s872_s17, %s1184_s17   ;;  %s816_s16 = sphi %s870_s16, %s1183_s16   ;;  %s812_s15 = sphi %s868_s15, %s1182_s15  }
   0xf   : > { %s46_s23 = sadd.s32 1, %s820_s17  ;;  %p53_p0 = scmp.ne.s32.totalorder %s820_s17, %s816_s16 }
  0x10   : > { %p54_p1 = scmp.eq.s32.totalorder %s832_s20, 0  ;;  %p59_p2 = scmp.ne.s32.totalorder %s816_s16, %s812_s15 }
  0x11   : > { %p906_p3 = scmp.eq.s32.totalorder %s512_s21, 0  ;;  %p155_p4 = scmp.eq.s32.totalorder %s512_s21, 1 }
  0x12   : > { %p910_p5 = por %p54_p1, %p53_p0  ;;  %p161_p6 = scmp.eq.s32.totalorder %s513_s22, 1 }
  0x13   : > { %s1163_s24 = scalar_select %p906_p3, 1, 0 }
  0x14   : > { %p916_p7 = por %p906_p3, %p59_p2  ;;  %p920_p8 = por %p155_p4, %p53_p0 }
  0x15   : > { %p924_p9 = por %p161_p6, %p59_p2  ;;  %p514_p10 = scmp.ge.s32.totalorder %s832_s20, 1 }
  0x16   : > { %s1165_s26 = scalar_select %p916_p7, 1, 0 }
  0x17   : > { %s1166_s27 = scalar_select %p920_p8, 1, 0 }
  0x18   : > { %s1167_s28 = scalar_select %p924_p9, 1, 0 }
  0x19   : > { %p168_p11 = scmp.lt.s32.totalorder %s832_s20, 3  ;;  %s1168_s2 = sld [smem:[#allocation18_spill]] }
  0x1a   : > { %p580_p0 = scmp.lt.s32.totalorder %s832_s20, 2  ;;  %s1170_s3 = sld [smem:[#allocation19_spill]] }
  0x1b   : > { %p933_p12 = pnand %p514_p10, %p168_p11 }
  0x1c   : > { %p946_p2 = pnand %p580_p0, %p910_p5 }
  0x1d   : > { %s1169_s6 = scalar_select %p933_p12, 1, 0 }
  0x1e   : > { %p560_p1 = pneg %p933_p12 }
  0x1f   : > { %s181_s5 = sshll.u32 %s1168_s2, 4  ;;  %s182_s5 = int_to_ptr.vmem [resolvable:$true] %s181_s5 }
  0x20   : > { %s192_s9 = sshll.u32 %s1170_s3, 4  ;;  %p952_p4 = pnand %p560_p1, %p906_p3  ;;  %s193_s9 = int_to_ptr.vmem [resolvable:$true] %s192_s9 }
  0x21   : > { %s1171_s10 = scalar_select %p946_p2, 1, 0 }
  0x22   : > { %s648_s12 = scalar_lea.vmem %s182_s5, 32  ;;  %p650_p10 = pneg %p952_p4 }
  0x23   : > { %p649_p6 = scmp.ne.s32.totalorder %s182_s5, %s648_s12  ;;  %p656_p9 = scmp.lt.s32.totalorder %s182_s5, %s182_s5 }
  0x24   : > { %p657_p8 = scmp.lt.s32.totalorder %s648_s12, %s648_s12 }
  0x25   : > { %p651_p11 = pnand %p650_p10, %p649_p6 }
  0x26   : > { %p658_p7 = por %p657_p8, %p656_p9 }
  0x27   : > { %p652_p13 = pneg %p651_p11 }
  0x29   : > { %p659_p5 = pnand %p658_p7, %p652_p13 }
  0x2b   : > { %662 = shalt.err (!%p659_p5)
}
  0x2c   : > { %s834_s13 = smov [#allocation8]   ;;  %s663_s14 = scalar_lea.vmem %s193_s9, 16 }
  0x2d   : > { %563 = dma.vmem_to_smem (!%p952_p4), %s182_s5, 32, %s834_s13, [#allocation5]  }
  0x2e   : > { %p664_p0 = scmp.ne.s32.totalorder %s193_s9, %s663_s14  ;;  %p671_p12 = scmp.lt.s32.totalorder %s193_s9, %s193_s9 }
  0x2f   : > { %p672_p2 = scmp.lt.s32.totalorder %s663_s14, %s663_s14 }
  0x30   : > { %p666_p1 = pnand %p664_p0, %p650_p10 }
  0x31   : > { %p673_p6 = por %p672_p2, %p671_p12 }
  0x32   : > { %p667_p3 = pneg %p666_p1 }
  0x34   : > { %p674_p11 = pnand %p673_p6, %p667_p3 }
  0x36   : > { %677 = shalt.err (!%p674_p11)
}
  0x37   : > { %s835_s21 = smov [#allocation9]   ;;  %s37_s22 = sadd.s32 1, %s828_s19 }
  0x38   : > { %566 = dma.vmem_to_smem (!%p952_p4), %s193_s9, 16, %s835_s21, [#allocation10]  }
  0x39   : > { %s964_s25 = sand.u32 1, %s820_s17   ;;  %p39_p3 = scmp.ge.s32.totalorder %s37_s22, 2 }
  0x3a   : > { %s1159_s29 = smul.u32 6, %s964_s25  ;;  %s1173_s0 = sld [smem:[#allocation17_spill]] }
  0x3b   : > { %s1188_s22 = smov (%p39_p3, %s37_s22), 0  ;;  %s541_s30 = smul.u32 96, %s828_s19 }
  0x3c   : > { %s41_s5 = ssub.s32 %s828_s19, %s1188_s22  ;;  %s207_s7 = scalar_lea.vmem [#allocation2], %s1159_s29 }
  0x3d   : > { %s215_s8 = sshll.u32 %s207_s7, 4  ;;  %p44_p7 = scmp.eq.s32.totalorder %s41_s5, 0  ;;  %s981_s8 = int_to_ptr.vmem [resolvable:$true] %s215_s8 }
  0x3e   : > { %s204_s14 = scalar_lea.sflag [#allocation3], %s964_s25  ;;  %p1174_p9 = scmp.ne.s32.totalorder %s1171_s10, 0 }
  0x3f   : > { %s986_s13 = scalar_select %p44_p7, %s820_s17, %s46_s23  }
  0x40   : > { %s979_s12 = scalar_lea.hbm %s1173_s0, %s541_s30  ;;  %p680_p12 = pneg %p1174_p9 }
  0x41   : > { %s678_s21 = scalar_lea.hbm %s979_s12, 96  ;;  %s683_s9 = scalar_lea.hbm %s1173_s0, 192 }
  0x42   : > { %p679_p8 = scmp.ne.s32.totalorder %s979_s12, %s678_s21  ;;  %p684_p4 = scmp.lt.u32.totalorder %s979_s12, %s1173_s0 }
  0x43   : > { %p685_p10 = scmp.lt.u32.totalorder %s683_s9, %s678_s21  ;;  %p687_p0 = scmp.lt.u32.totalorder %s678_s21, %s979_s12 }
  0x44   : > { %p681_p13 = pnand %p680_p12, %p679_p8 }
  0x45   : > { %p686_p5 = por %p685_p10, %p684_p4 }
  0x46   : > { %p682_p2 = pneg %p681_p13 }
  0x47   : > { %p688_p1 = por %p687_p0, %p686_p5 }
  0x49   : > { %p689_p6 = pnand %p688_p1, %p682_p2 }
  0x4b   : > { %692 = shalt.err (!%p689_p6)
}
  0x4c   : > { %s693_s23 = scalar_lea.vmem %s981_s8, 96  ;;  %s836_s5 = smov [#allocation2]  }
  0x4d   : > { %p694_p11 = scmp.ne.s32.totalorder %s981_s8, %s693_s23  ;;  %s698_s7 = sshll.u32 %s836_s5, 4  ;;  %s699_s7 = int_to_ptr.vmem [resolvable:$false] %s698_s7 }
  0x4e   : > { %s700_s29 = scalar_lea.vmem %s699_s7, 192  ;;  %p701_p8 = scmp.lt.s32.totalorder %s981_s8, %s699_s7 }
  0x4f   : > { %p696_p3 = pnand %p694_p11, %p680_p12  ;;  %p702_p13 = scmp.lt.s32.totalorder %s700_s29, %s693_s23 }
  0x51   : > { %p697_p7 = pneg %p696_p3  ;;  %p703_p4 = por %p702_p13, %p701_p8 }
  0x53   : > { %p704_p10 = pnand %p703_p4, %p697_p7 }
  0x55   : > { %707 = shalt.err (!%p704_p10)
}
  0x56   : > { %s837_s21 = smov 32   ;;  %s838_s9 = smov 2  }
  0x57   : > { %570 = dma.hbm_to_vmem [thread:$0]  (!%p1174_p9), %s979_s12, 96, %s981_s8, %s204_s14, %s837_s21, %s837_s21, %s838_s9  }
  0x58   : > { %s1024_s5 = scalar_lea.hbm %s1149_s1, %s541_s30  ;;  %s1175_s7 = smul.u32 6, %s964_s25 }
  0x59   : > { %s226_s2 = scalar_lea.sflag [#allocation7], %s964_s25  ;;  %s708_s3 = scalar_lea.hbm %s1024_s5, 96 }
  0x5a   : > { %s229_s29 = scalar_lea.vmem [#allocation6], %s1175_s7  ;;  %p709_p2 = scmp.ne.s32.totalorder %s1024_s5, %s708_s3 }
  0x5b   : > { %s237_s0 = sshll.u32 %s229_s29, 4  ;;  %s713_s30 = scalar_lea.hbm %s1149_s1, 192  ;;  %s1028_s0 = int_to_ptr.vmem [resolvable:$true] %s237_s0 }
  0x5c   : > { %p711_p5 = pnand %p709_p2, %p680_p12  ;;  %p714_p1 = scmp.lt.u32.totalorder %s1024_s5, %s1149_s1 }
  0x5d   : > { %p715_p6 = scmp.lt.u32.totalorder %s713_s30, %s708_s3  ;;  %p717_p3 = scmp.lt.u32.totalorder %s708_s3, %s1024_s5 }
  0x5e   : > { %p712_p0 = pneg %p711_p5 }
  0x5f   : > { %p716_p11 = por %p715_p6, %p714_p1 }
  0x61   : > { %p718_p7 = por %p717_p3, %p716_p11 }
  0x63   : > { %p719_p8 = pnand %p718_p7, %p712_p0 }
  0x65   : > { %722 = shalt.err (!%p719_p8)
}
  0x66   : > { %s723_s23 = scalar_lea.vmem %s1028_s0, 96  ;;  %s839_s7 = smov [#allocation6]  }
  0x67   : > { %p724_p13 = scmp.ne.s32.totalorder %s1028_s0, %s723_s23  ;;  %s728_s29 = sshll.u32 %s839_s7, 4  ;;  %s729_s29 = int_to_ptr.vmem [resolvable:$false] %s728_s29 }
  0x68   : > { %s730_s8 = scalar_lea.vmem %s729_s29, 192  ;;  %p731_p2 = scmp.lt.s32.totalorder %s1028_s0, %s729_s29 }
  0x69   : > { %p726_p4 = pnand %p724_p13, %p680_p12  ;;  %p732_p5 = scmp.lt.s32.totalorder %s730_s8, %s723_s23 }
  0x6b   : > { %p727_p10 = pneg %p726_p4  ;;  %p733_p1 = por %p732_p5, %p731_p2 }
  0x6d   : > { %p734_p6 = pnand %p733_p1, %p727_p10 }
  0x6f   : > { %737 = shalt.err (!%p734_p6)
}
  0x70   : > { %573 = dma.hbm_to_vmem [thread:$0]  (!%p1174_p9), %s1024_s5, 96, %s1028_s0, %s226_s2, %s837_s21, %s837_s21, %s838_s9  }
  0x71   : > { %p1176_p12 = scmp.ne.s32.totalorder %s1169_s6, 0 }
  0x72   : > { %s1062_s3 = sand.u32 (!%p1176_p12), 1, %s816_s16   ;;  %p1177_p0 = scmp.ne.s32.totalorder (!%p1176_p12), %s1165_s26, 0 }
  0x73   : > { %249 = sbr.rel (%p1176_p12) target bundleno = 205 (0xcd), region = 36  ;;  %s252_s10 = scalar_lea.sflag (!%p1176_p12), [#allocation3], %s1062_s3 }
  0x74   : > { %s1065_s12 = smul.u32 (!%p1176_p12), 6, %s1062_s3 }
  0x76   : > { %s255_s30 = scalar_lea.vmem (!%p1176_p12), [#allocation2], %s1065_s12 }
  0x7a   : > { %791 = dma.done.wait (%p1177_p0), %s252_s10, 96  }
  0x7b   : > { %793 = vsyncadd (%p1177_p0), %s252_s10, 4294967200  ;;  %s261_s0 = scalar_lea.sflag [#allocation7], %s1062_s3  ;;  %s1075_s2 = scalar_lea.vmem [#allocation6], %s1065_s12 }
  0x7c   : > { %795 = dma.done.wait (%p1177_p0), %s261_s0, 96  }
  0x7d   : > { %797 = vsyncadd (%p1177_p0), %s261_s0, 4294967200  ;;  %p1178_p9 = scmp.ne.s32.totalorder %s1163_s24, 0 }
  0x7f   : > { %799 = dma.done.wait (%p1178_p9), [#allocation5], 32  }
  0x80   : > { %801 = vsyncadd (%p1178_p9), [#allocation5], 4294967264 }
  0x81   : > { %803 = dma.done.wait (%p1178_p9), [#allocation10], 16  }
  0x82   : > { %805 = vsyncadd (%p1178_p9), [#allocation10], 4294967280 }
  0x83   : > { %277 = sfence }
  0x84   : > { %s308_s6 = sld [smem:[#allocation8]]  ;;  %s525_s25 = sld [smem:[#allocation8 + $0x1]]  ;;  %v303_v0 = vld [vmem:[%s255_s30] sm:$0x3]  ;;  %v523_v1 = vld [vmem:[%s255_s30 + $0x2] sm:$0x3] }
  0x85   : > { %s526_s21 = sld [smem:[#allocation8 + $0x2]]  ;;  %s319_s9 = sld [smem:[#allocation9]]  ;;  %v524_v2 = vld [vmem:[%s255_s30 + $0x4] sm:$0x3]  ;;  %v348_v29 = vld [vmem:[%s1075_s2] sm:$0x3] }
  0x86   : > { %s527_s5 = sld [smem:[#allocation8 + $0x80]]  ;;  %s528_s26 = sld [smem:[#allocation8 + $0x81]]  ;;  %v533_v30 = vld [vmem:[%s1075_s2 + $0x2] sm:$0x3]  ;;  %v534_v35 = vld [vmem:[%s1075_s2 + $0x4] sm:$0x3] }
  0x87   : > { %s529_s14 = sld [smem:[#allocation8 + $0x82]]  ;;  %s530_s11 = sld [smem:[#allocation9 + $0x1]]  ;;  %v351_v33 = vadd.f32 %v533_v30, %v348_v29 }
  0x88   : > { %s302_s24 = scalar_lea.vmem [#allocation11], %s1065_s12  ;;  %s545_s7 = smul.u32 96, %s824_s18 }
  0x89   : > { %v354_v36 = vadd.f32 %v534_v35, %v351_v33  ;;  %s380_s23 = sshll.u32 %s302_s24, 4  ;;  %s366_s10 = scalar_lea.sflag [#allocation4], %s1062_s3  ;;  %s1094_s23 = int_to_ptr.vmem [resolvable:$true] %s380_s23 }
  0x8a   : > { %v309_v3 = vstv %s308_s6  ;;  %v312_v4 = vstv %s525_s25  ;;  %s1099_s12 = scalar_lea.hbm %s1152_s4, %s545_s7  ;;  %s738_s30 = scalar_lea.vmem %s1094_s23, 96 }
  0x8b   : > { %v310_v5 = vmul.f32 %v309_v3, %v303_v0  ;;  %v313_v6 = vmul.f32 %v523_v1, %v312_v4  ;;  %v316_v7 = vstv %s526_s21  ;;  %v320_v13 = vstv %s319_s9  ;;  %p739_p11 = scmp.ne.s32.totalorder %s1094_s23, %s738_s30  ;;  %p1179_p3 = scmp.ne.s32.totalorder %s1166_s27, 0 }
  0x8c   : > { %v317_v8 = vmul.f32 %v524_v2, %v316_v7  ;;  %v323_v9 = vstv %s527_s5  ;;  %v326_v12 = vstv %s528_s26  ;;  %v355_v37 = vmul.f32 0.33333334, %v354_v36  ;;  %s840_s18 = smov [#allocation11]  }
  0x8d   : > { %v314_v10 = vadd.f32 %v313_v6, %v310_v5  ;;  %v324_v11 = vmul.f32 %v323_v9, %v303_v0  ;;  %v327_v14 = vmul.f32 %v523_v1, %v326_v12  ;;  %v330_v15 = vstv %s529_s14  ;;  %p740_p7 = pnand %p739_p11, %p1179_p3  ;;  %s742_s0 = sshll.u32 %s840_s18, 4  ;;  %s743_s0 = int_to_ptr.vmem [resolvable:$false] %s742_s0 }
  0x8e   : > { %v331_v17 = vmul.f32 %v524_v2, %v330_v15  ;;  %v334_v20 = vstv %s530_s11  ;;  %s744_s2 = scalar_lea.vmem %s743_s0, 192  ;;  %p745_p13 = scmp.lt.s32.totalorder %s1094_s23, %s743_s0 }
  0x8f   : > { %v318_v16 = vadd.f32 %v317_v8, %v314_v10  ;;  %v328_v18 = vadd.f32 %v327_v14, %v324_v11  ;;  %p741_p8 = pneg %p740_p7  ;;  %p746_p4 = scmp.lt.s32.totalorder %s744_s2, %s738_s30 }
  0x91   : > { %v321_v19 = vadd.f32 %v320_v13, %v318_v16  ;;  %v332_v21 = vadd.f32 %v331_v17, %v328_v18  ;;  %p747_p10 = por %p746_p4, %p745_p13 }
  0x93   : > { %v531_v22 = vmul.f32 -1.442695, %v321_v19  ;;  %v335_v23 = vadd.f32 %v334_v20, %v332_v21  ;;  %p748_p2 = pnand %p747_p10, %p741_p8 }
  0x95   : > { %638 = vpow2.f32 %v531_v22  ;;  %v532_v24 = vmul.f32 -1.442695, %v335_v23 }
  0x97   : > { %640 = vpow2.f32 %v532_v24 }
  0x9f   : > { %v639_v25 = vpop.eup %638 }
  0xa0   : > { %v339_v26 = vadd.f32 1.0, %v639_v25 }
  0xa1   : > { %v641_v27 = vpop.eup %640 }
  0xa2   : > { %642 = vrcp.f32 %v339_v26  ;;  %v345_v28 = vadd.f32 1.0, %v641_v27 }
  0xa4   : > { %644 = vrcp.f32 %v345_v28 }
  0xac   : > { %v643_v31 = vpop.eup %642 }
  0xad   : > { %360 = vst [vmem:[%s302_s24] sm:$0x3] %v643_v31  ;;  %v356_v32 = vadd.f32 1e-12, %v643_v31 }
  0xae   : > { %v645_v34 = vpop.eup %644 }
  0xaf   : > { %646 = vrcp.f32 %v356_v32  ;;  %535 = vst [vmem:[%s302_s24 + $0x2] sm:$0x3] %v645_v34 }
  0xb9   : > { %v647_v38 = vpop.eup %646 }
  0xba   : > { %v358_v39 = vmul.f32 %v647_v38, %v355_v37 }
  0xbc   : > { %v359_v40 = vmin.f32 %v358_v39, 1.0 }
  0xbe   : > { %536 = vst [vmem:[%s302_s24 + $0x4] sm:$0x3] %v359_v40 }
  0xbf   : > { %751 = shalt.err (!%p748_p2)
}
  0xc0   : > { %s752_s6 = scalar_lea.hbm %s1099_s12, 96  ;;  %s756_s9 = scalar_lea.hbm %s1152_s4, 192 }
  0xc1   : > { %p753_p5 = scmp.ne.s32.totalorder %s1099_s12, %s752_s6  ;;  %p757_p12 = scmp.lt.u32.totalorder %s1099_s12, %s1152_s4 }
  0xc2   : > { %p758_p0 = scmp.lt.u32.totalorder %s756_s9, %s752_s6  ;;  %p760_p11 = scmp.lt.u32.totalorder %s752_s6, %s1099_s12 }
  0xc3   : > { %p754_p1 = pnand %p753_p5, %p1179_p3 }
  0xc4   : > { %p759_p9 = por %p758_p0, %p757_p12 }
  0xc5   : > { %p755_p6 = pneg %p754_p1 }
  0xc6   : > { %p761_p7 = por %p760_p11, %p759_p9 }
  0xc8   : > { %p762_p8 = pnand %p761_p7, %p755_p6 }
  0xca   : > { %765 = shalt.err (!%p762_p8)
}
  0xcb   : > { %s841_s14 = smov 32   ;;  %s842_s11 = smov 2  }
  0xcc   : > { %558 = dma.vmem_to_hbm [thread:$0]  (%p1179_p3), %s1094_s23, 96, %s1099_s12, %s366_s10, %s841_s14, %s841_s14, %s842_s11  }
  0xcd PF: > { %s395_s24 = sand.u32 1, %s812_s15   ;;  %p1180_p13 = scmp.ne.s32.totalorder %s1167_s28, 0 }
  0xce   : > { %p1181_p4 = scmp.ge.s32.totalorder %s832_s20, 2  ;;  %s396_s7 = scalar_lea.sflag [#allocation4], %s395_s24 }
  0xd0   : > { %p575_p10 = pnand %p1181_p4, %p1180_p13 }
  0xd2   : > { %807 = dma.done.wait (!%p575_p10), %s396_s7, 96  }
  0xd3   : > { %809 = vsyncadd (!%p575_p10), %s396_s7, 4294967200  ;;  %s25_s20 = sadd.s32 1, %s832_s20   ;;  %s1182_s15 = smov %s816_s16 }
  0xd4   : > { %p22_p2 = scmp.ge.s32.totalorder %s25_s20, 4   ;;  %s1183_s16 = smov %s820_s17 }
  0xd5   : > { %s1184_s17 = smov %s986_s13  ;;  %s1185_s18 = smov %s828_s19 }
  0xd6   : > { %s1186_s19 = smov %s1188_s22  ;;  %24 = sbr.rel (!%p22_p2) target bundleno = 14 (0xe), region = 109 }
  0xdd   :  { %401 = vsyncpa [#allocation3], 1 }
  0xde   :  { %403 = vsyncpa [#allocation3 + $0x1], 1 }
  0xdf   :  { %404 = vsyncpa [#allocation7], 1 }
  0xe0   :  { %406 = vsyncpa [#allocation7 + $0x1], 1 }
  0xe1   :  { %407 = vsyncpa [#allocation4], 1 }
  0xe2   :  { %409 = vsyncpa [#allocation4 + $0x1], 1 }
  0xe3   :  { %410 = vsyncpa [#allocation5], 1 }
  0xe4   :  { %412 = vsyncpa [#allocation5 + $0x1], 1 }
  0xe5   :  { %413 = vsyncpa [#allocation10], 1 }

</bundles_post_ra>
